<compile_context>
chip_gen: v7x
topology: tpu7x:2x2x1
jax: 0.10.0
libtpu: 0.0.40
codegen_flags: <defaults>
</compile_context>

<pallas_src>
import numpy as np
import jax
import jax.numpy as jnp
from jax.experimental import pallas as pl
from jax.experimental.pallas import tpu as pltpu


# ----------------------------------------------------------------------------
# Fused kernel: two bf16 MXU matmuls + f32 tanh, one lane-dense (tm, 2H) output.
#   bias slab rows: 0 = [bc1 | ba1]
#                   1 = [bc2 | ba2]
# ----------------------------------------------------------------------------
def mlp_base_kernel(x_ref, w1_ref, w2_ref, b_ref, h2_ref):
    # bf16 operands feed the MXU; accumulate in f32, tanh/bias in f32
    # (v5e VPU/EUP have no bf16, so all non-matmul math stays f32).
    x = x_ref[...].astype(jnp.bfloat16)

    # Layer 1 (critic+actor fused): (tm, Din) @ (Din, 2H) -> (tm, 2H)
    h1 = jnp.tanh(
        jnp.dot(x, w1_ref[...], preferred_element_type=jnp.float32)
        + b_ref[0:1, :]
    )

    # Layer 2 (block-diagonal critic/actor): (tm, 2H) @ (2H, 2H) -> (tm, 2H)
    h2 = jnp.tanh(
        jnp.dot(h1.astype(jnp.bfloat16), w2_ref[...],
                preferred_element_type=jnp.float32)
        + b_ref[1:2, :]
    )
    h2_ref[...] = h2  # lane-dense [hc2 | ha2] output


def mlp_base_forward(inputs, rnn_hxs, masks, add_input, packed, *, block_b=128):
    """Mirrors MLPBase.forward (recurrent=False). masks / add_input are unused
    by the non-recurrent forward, exactly as in the reference module."""
    del masks, add_input  # unused in the non-recurrent forward
    B, Din = inputs.shape
    H = packed["hidden_size"]
    H2 = 2 * H

    # Batch tile: multiple of 8 sublanes, capped at block_b; pad B up to a
    # multiple of the tile so the grid divides evenly.
    tm = min(block_b, 8 * ((B + 7) // 8))
    Bp = tm * ((B + tm - 1) // tm)
    x = inputs if Bp == B else jnp.pad(inputs, ((0, Bp - B), (0, 0)))

    flops = 2 * Bp * Din * H2 + 2 * Bp * H2 * H2
    bytes_accessed = (
        Bp * Din * 4                    # x
        + packed["w1"].size * 2         # bf16 fused layer-1 weight
        + packed["w2"].size * 2         # bf16 block-diag layer-2 weight
        + packed["bias"].size * 4       # bias slab
        + Bp * H2 * 4                   # h2 output
    )

    h2 = pl.pallas_call(
        mlp_base_kernel,
        out_shape=jax.ShapeDtypeStruct((Bp, H2), jnp.float32),
        grid=(Bp // tm,),
        in_specs=[
            pl.BlockSpec((tm, Din), lambda i: (i, 0)),   # x tiles over batch
            pl.BlockSpec((Din, H2), lambda i: (0, 0)),   # weights stay resident
            pl.BlockSpec((H2, H2), lambda i: (0, 0)),
            pl.BlockSpec((2, H2), lambda i: (0, 0)),
        ],
        out_specs=pl.BlockSpec((tm, H2), lambda i: (i, 0)),
        compiler_params=pltpu.CompilerParams(
            dimension_semantics=("parallel",),   # v7x: shard tiles across 2 TCs
            vmem_limit_bytes=32 << 20,           # explicit; safe on v5e/v6e/v7x
        ),
        cost_estimate=pl.CostEstimate(
            flops=flops,
            transcendentals=Bp * 2 * H2,         # two tanh layers
            bytes_accessed=bytes_accessed,
        ),
    )(x, packed["w1"], packed["w2"], packed["bias"])

    h2 = h2[:B]
    hidden_critic = h2[:, :H]
    hidden_actor = h2[:, H:]
    # Value head: one tiny (B,H)@(H,1) dot in XLA (removes the masked 1-lane
    # store and the second output DMA from the kernel).
    value = hidden_critic @ packed["wv"] + packed["bv"]
    return value, hidden_actor, rnn_hxs


# ----------------------------------------------------------------------------
# Deterministic parameter init (orthogonal * sqrt(2), zero biases), matching
# the init_() helper in the reference module.
# ----------------------------------------------------------------------------
def _orthogonal(key, out_dim, in_dim, gain):
    # torch orthogonal_ on a (out, in) matrix; return its transpose (in, out).
    big, small = max(out_dim, in_dim), min(out_dim, in_dim)
    a = jax.random.normal(key, (big, small), jnp.float32)
    q, r = jnp.linalg.qr(a)
    sign = jnp.sign(jnp.diag(r))
    sign = jnp.where(sign == 0, 1.0, sign)       # guard against zero diagonal
    q = q * sign[None, :]
    w = q if out_dim >= in_dim else q.T          # (out, in)
    return (gain * w).T.astype(jnp.float32)      # (in, out)


def make_params(key, num_inputs, hidden_size):
    gain = float(np.sqrt(2.0))
    ks = jax.random.split(key, 5)
    return {
        "wc1": _orthogonal(ks[0], hidden_size, num_inputs, gain),
        "bc1": jnp.zeros((1, hidden_size), jnp.float32),
        "wc2": _orthogonal(ks[1], hidden_size, hidden_size, gain),
        "bc2": jnp.zeros((1, hidden_size), jnp.float32),
        "wa1": _orthogonal(ks[2], hidden_size, num_inputs, gain),
        "ba1": jnp.zeros((1, hidden_size), jnp.float32),
        "wa2": _orthogonal(ks[3], hidden_size, hidden_size, gain),
        "ba2": jnp.zeros((1, hidden_size), jnp.float32),
        # TODO(synk): reference declares critic_linear as
        # Linear(hidden_size + action_output_size, 1) but applies it to a
        # hidden_size-dim vector (shape mismatch in the original forward);
        # we use a Linear(hidden_size, 1) head so the forward is runnable.
        "wv": _orthogonal(ks[4], 1, hidden_size, gain),
        "bv": jnp.zeros((1, 1), jnp.float32),
    }


def pack_params(params, hidden_size):
    """Fuse the parameter arrays into the kernel-friendly packed layout."""
    H = hidden_size
    # Fused layer-1 weight: (Din, 2H) = [wc1 | wa1], bf16 MXU operand.
    w1 = jnp.concatenate([params["wc1"], params["wa1"]], axis=1).astype(jnp.bfloat16)
    # Block-diagonal layer-2 weight: (2H, 2H), bf16 MXU operand.
    z = jnp.zeros((H, H), jnp.float32)
    w2 = jnp.block([[params["wc2"], z], [z, params["wa2"]]]).astype(jnp.bfloat16)
    # Bias slab: (2, 2H) f32 (added post-matmul in f32).
    row0 = jnp.concatenate([params["bc1"].reshape(-1), params["ba1"].reshape(-1)])
    row1 = jnp.concatenate([params["bc2"].reshape(-1), params["ba2"].reshape(-1)])
    bias = jnp.stack([row0, row1], axis=0).astype(jnp.float32)
    return {
        "w1": w1,
        "w2": w2,
        "bias": bias,
        "wv": params["wv"],   # value head runs in the XLA wrapper
        "bv": params["bv"],
        "hidden_size": H,
    }


def _reference_forward(x, params):
    hc = jnp.tanh(x @ params["wc1"] + params["bc1"])
    hc = jnp.tanh(hc @ params["wc2"] + params["bc2"])
    ha = jnp.tanh(x @ params["wa1"] + params["ba1"])
    ha = jnp.tanh(ha @ params["wa2"] + params["ba2"])
    return hc @ params["wv"] + params["bv"], ha


if __name__ == "__main__":
    B = 256               # batched env steps (2 grid tiles of 128 rows)
    NUM_INPUTS = 16       # observation features
    HIDDEN = 64           # hidden_size
    ADD_INPUT_DIM = 5     # add_input is unused by forward, kept for signature parity

    key = jax.random.PRNGKey(0)
    k_x, k_p = jax.random.split(key)

    x = jax.random.normal(k_x, (B, NUM_INPUTS), jnp.float32)
    rnn_hxs = jnp.zeros((B, 1), jnp.float32)       # recurrent_hidden_state_size == 1
    masks = jnp.ones((B, 1), jnp.float32)
    add_input = jnp.zeros((B, ADD_INPUT_DIM), jnp.float32)

    params = make_params(k_p, NUM_INPUTS, HIDDEN)
    packed = pack_params(params, HIDDEN)

    value, hidden_actor, out_hxs = mlp_base_forward(x, rnn_hxs, masks, add_input, packed)
    jax.block_until_ready((value, hidden_actor, out_hxs))

    # sanity check against pure-JAX f32 reference (bf16 MXU -> loosened tol)
    ref_value, ref_actor = _reference_forward(x, params)
    assert value.shape == (B, 1) and hidden_actor.shape == (B, HIDDEN)
    np.testing.assert_allclose(np.asarray(value), np.asarray(ref_value), rtol=2e-2, atol=2e-2)
    np.testing.assert_allclose(np.asarray(hidden_actor), np.asarray(ref_actor), rtol=2e-2, atol=2e-2)

    print("KERNEL_OK")
</pallas_src>

<mosaic_0001>
module attributes {stable_mosaic.version = 11 : i64} {
  func.func @mlp_base_kernel(%arg0: i32, %arg1: memref<128x16xf32, #tpu.memory_space<vmem>>, %arg2: memref<16x128xbf16, #tpu.memory_space<vmem>>, %arg3: memref<128x128xbf16, #tpu.memory_space<vmem>>, %arg4: memref<2x128xf32, #tpu.memory_space<vmem>>, %arg5: memref<128x128xf32, #tpu.memory_space<vmem>>) attributes {dimension_semantics = [#tpu.dimension_semantics<parallel>], iteration_bounds = array<i64: 2>, scalar_prefetch = 0 : i64, scratch_operands = 0 : i64, tpu.core_type = #tpu.core_type<tc>, window_params = [{transform_indices = @transform_0, window_bounds = array<i64: 128, 16>}, {pipeline_mode = #tpu.pipeline_mode<synchronous>, transform_indices = @transform_1, window_bounds = array<i64: 16, 128>}, {pipeline_mode = #tpu.pipeline_mode<synchronous>, transform_indices = @transform_2, window_bounds = array<i64: 128, 128>}, {pipeline_mode = #tpu.pipeline_mode<synchronous>, transform_indices = @transform_3, window_bounds = array<i64: 2, 128>}, {transform_indices = @transform_4, window_bounds = array<i64: 128, 128>}]} {
    %c0 = arith.constant 0 : index
    %c0_0 = arith.constant 0 : index
    %0 = vector.load %arg1[%c0, %c0_0] : memref<128x16xf32, #tpu.memory_space<vmem>>, vector<128x16xf32>
    %1 = arith.truncf %0 : vector<128x16xf32> to vector<128x16xbf16>
    %c0_1 = arith.constant 0 : index
    %c0_2 = arith.constant 0 : index
    %2 = vector.load %arg2[%c0_1, %c0_2] : memref<16x128xbf16, #tpu.memory_space<vmem>>, vector<16x128xbf16>
    %cst = arith.constant dense<0.000000e+00> : vector<128x128xf32>
    %3 = tpu.matmul %1, %2, %cst {dimension_numbers = #tpu.dot_dimension_numbers<[1], [0], [0], [1], [0, 0, 1, 1], [], []>} : vector<128x16xbf16>, vector<16x128xbf16>, vector<128x128xf32> -> vector<128x128xf32>
    %c0_3 = arith.constant 0 : index
    %c0_4 = arith.constant 0 : index
    %4 = vector.load %arg4[%c0_3, %c0_4] : memref<2x128xf32, #tpu.memory_space<vmem>>, vector<1x128xf32>
    %5 = vector.broadcast %4 : vector<1x128xf32> to vector<128x128xf32>
    %6 = arith.addf %3, %5 : vector<128x128xf32>
    %7 = math.tanh %6 : vector<128x128xf32>
    %8 = arith.truncf %7 : vector<128x128xf32> to vector<128x128xbf16>
    %c0_5 = arith.constant 0 : index
    %c0_6 = arith.constant 0 : index
    %9 = vector.load %arg3[%c0_5, %c0_6] : memref<128x128xbf16, #tpu.memory_space<vmem>>, vector<128x128xbf16>
    %cst_7 = arith.constant dense<0.000000e+00> : vector<128x128xf32>
    %10 = tpu.matmul %8, %9, %cst_7 {dimension_numbers = #tpu.dot_dimension_numbers<[1], [0], [0], [1], [0, 0, 1, 1], [], []>} : vector<128x128xbf16>, vector<128x128xbf16>, vector<128x128xf32> -> vector<128x128xf32>
    %c1 = arith.constant 1 : index
    %c0_8 = arith.constant 0 : index
    %11 = vector.load %arg4[%c1, %c0_8] : memref<2x128xf32, #tpu.memory_space<vmem>>, vector<1x128xf32>
    %12 = vector.broadcast %11 : vector<1x128xf32> to vector<128x128xf32>
    %13 = arith.addf %10, %12 : vector<128x128xf32>
    %14 = math.tanh %13 : vector<128x128xf32>
    %c0_9 = arith.constant 0 : index
    %c0_10 = arith.constant 0 : index
    %15 = vector.load %arg5[%c0_9, %c0_10] : memref<128x128xf32, #tpu.memory_space<vmem>>, vector<128x128xf32>
    tpu.vector_store %arg5[%c0_9, %c0_10], %14 {strides = array<i32>} : memref<128x128xf32, #tpu.memory_space<vmem>>, vector<128x128xf32>,
    return
  }
  func.func @transform_0(%arg0: i32) -> (i32, i32) {
    %c0_i32 = arith.constant 0 : i32
    %c0_i32_0 = arith.constant 0 : i32
    return %arg0, %c0_i32 : i32, i32
  }
  func.func @transform_1(%arg0: i32) -> (i32, i32) {
    %c0_i32 = arith.constant 0 : i32
    %c0_i32_0 = arith.constant 0 : i32
    %c0_i32_1 = arith.constant 0 : i32
    return %c0_i32, %c0_i32_0 : i32, i32
  }
  func.func @transform_2(%arg0: i32) -> (i32, i32) {
    %c0_i32 = arith.constant 0 : i32
    %c0_i32_0 = arith.constant 0 : i32
    %c0_i32_1 = arith.constant 0 : i32
    return %c0_i32, %c0_i32_0 : i32, i32
  }
  func.func @transform_3(%arg0: i32) -> (i32, i32) {
    %c0_i32 = arith.constant 0 : i32
    %c0_i32_0 = arith.constant 0 : i32
    %c0_i32_1 = arith.constant 0 : i32
    return %c0_i32, %c0_i32_0 : i32, i32
  }
  func.func @transform_4(%arg0: i32) -> (i32, i32) {
    %c0_i32 = arith.constant 0 : i32
    %c0_i32_0 = arith.constant 0 : i32
    return %arg0, %c0_i32 : i32, i32
  }
}

</mosaic_0001>

<bundles_post_ra>
// kernel: tpu_custom_call.1
= control target key start
LH: loop header
LB: loop body
LE: loop exit
PB: predicated region body
PF: predicated region fallthrough
CT: control target
= control target key end

     0   :  { %9 = vsyncpa [#allocation3], 0  ;;  %s1188_s0 = inlined_call_operand.vmem [shape: f32[256,16], index: 0, kind: input, shape index: {}]   ;;  %s1189_s1 = inlined_call_operand.vmem [shape: bf16[16,128], index: 1, kind: input, shape index: {}]   ;;  %s1190_s2 = inlined_call_operand.vmem [shape: bf16[128,128], index: 2, kind: input, shape index: {}]   ;;  %s1191_s3 = inlined_call_operand.vmem [shape: f32[2,128], index: 3, kind: input, shape index: {}]   ;;  %s1192_s4 = inlined_call_operand.hbm [shape: f32[256,128], index: 4, kind: output, shape index: {}]  }
   0x1   :  { %11 = vsyncpa [#allocation3 + $0x1], 0  ;;  %s986_s15 = smov 0   ;;  %s988_s16 = smov 0  }
   0x2   :  { %s990_s17 = smov 0   ;;  %s992_s18 = smov 0  }
   0x3 LB: > { %s1007_s19 = sadd.s32 4294967295, %s956_s18   ;;  %s657_s20 = sadd.s32 4294967294, %s956_s18   ;;  %s956_s18 = sphi %s992_s18, %s1198_s18   ;;  %s952_s17 = sphi %s990_s17, %s1197_s17   ;;  %s948_s16 = sphi %s988_s16, %s1196_s16   ;;  %s944_s15 = sphi %s986_s15, %s1195_s15  }
   0x4   : > { %s1011_s21 = sadd.s32 1, %s956_s18   ;;  %s113_s22 = sadd.s32 1, %s952_s17 }
   0x5   : > { %s110_s23 = ssub.s32 %s956_s18, %s1011_s21  ;;  %p123_p0 = scmp.ne.s32.totalorder %s952_s17, %s948_s16 }
   0x6   : > { %p111_p1 = scmp.eq.s32.totalorder %s110_s23, 0  ;;  %p124_p2 = scmp.eq.s32.totalorder %s1007_s19, 1 }
   0x7   : > { %p129_p3 = scmp.ne.s32.totalorder %s948_s16, %s944_s15  ;;  %p130_p4 = scmp.eq.s32.totalorder %s657_s20, 1 }
   0x8   : > { %s1022_s24 = scalar_select %p111_p1, %s952_s17, %s113_s22  }
   0x9   : > { %p1024_p5 = por %p124_p2, %p123_p0  ;;  %p1028_p6 = por %p130_p4, %p129_p3 }
   0xa   : > { %p660_p7 = scmp.ge.s32.totalorder %s956_s18, 1  ;;  %p166_p8 = scmp.lt.s32.totalorder %s956_s18, 3 }
   0xc   : > { %p167_p9 = pnand %p660_p7, %p166_p8 }
   0xd   : > { %v821_v0 = vld [vmem:[%s1189_s1] sm:$0xff] (!%p167_p9)   ;;  %s662_s29 = sshll.u32 (!%p167_p9), %s1007_s19, 4  ;;  %v823_v2 = vld [vmem:[%s1190_s2 + $0x8] sm:$0xff] (!%p167_p9)   ;;  %v824_v3 = vld [vmem:[%s1190_s2 + $0x10] sm:$0xff] (!%p167_p9)   ;;  %vm237_vm0 = vcmask (!%p167_p9), 130048   ;;  %s688_s14 = sshll.u32 (!%p167_p9), %s1007_s19, 11 }
   0xe   : > { %170 = sbr.rel (%p167_p9) target bundleno = 526 (0x20e), region = 36  ;;  %p193_p10 = scmp.lt.s32.totalorder (!%p167_p9), %s662_s29, 31  ;;  %714 = vmatprep.subr.bf16.mxu0 (!%p167_p9), %v821_v0  ;;  %v822_v1 = vld [vmem:[%s1190_s2] sm:$0xff] (!%p167_p9)   ;;  %v825_v28 = vld [vmem:[%s1190_s2 + $0x18] sm:$0xff] (!%p167_p9)   ;;  %v827_v30 = vld [vmem:[%s1190_s2 + $0x28] sm:$0xff] (!%p167_p9)  }
   0xf   : > { %715 = vmatpush3.bf16.msra.mxu0 (!%p167_p9), %v821_v0  ;;  %764 = vmatprep.subr.bf16.mxu1 (!%p167_p9), %v822_v1  ;;  %v826_v29 = vld [vmem:[%s1190_s2 + $0x20] sm:$0xff] (!%p167_p9)   ;;  %v828_v31 = vld [vmem:[%s1190_s2 + $0x30] sm:$0xff] (!%p167_p9)   ;;  %v829_v32 = vld [vmem:[%s1190_s2 + $0x38] sm:$0xff] (!%p167_p9)   ;;  %s1138_s27 = scalar_lea.hbm (!%p167_p9), %s1192_s4, %s688_s14 }
  0x10   : > { %732 = vmatprep.subr.bf16.mxu0 (!%p167_p9), %v822_v1  ;;  %772 = vmatpush3.bf16.msra.mxu1 (!%p167_p9), %v822_v1  ;;  %v664_v33 = vld [vmem:[%s1191_s3] ss:$0 sm:$0xff] (!%p167_p9) }
  0x11   : > { %765 = vmatprep.subr.bf16.mxu1 (!%p167_p9), %v823_v2 }
  0x14   : > { %773 = vmatpush3.bf16.msra.mxu1 (!%p167_p9), %v823_v2 }
  0x15   : > { %s1200_s29 = smov (!%p193_p10, %s662_s29), 31  ;;  %766 = vmatprep.subr.bf16.mxu1 %v824_v3 }
  0x16   : > { %s663_s8 = sshll.u32 %s1200_s29, 3  ;;  %s958_s29 = smov [#allocation2]  }
  0x17   : > { %s1047_s11 = scalar_lea.vmem %s1188_s0, %s663_s8  ;;  %s898_s30 = sshll.u32 %s958_s29, 4  ;;  %s899_s30 = int_to_ptr.vmem [resolvable:$false] %s898_s30 }
  0x18   : > { %v200_v4 = vld [vmem:[%s1047_s11] sm:$0xff]  ;;  %v201_v5 = vld [vmem:[%s1047_s11 + $0x8] sm:$0xff]  ;;  %v202_v6 = vld [vmem:[%s1047_s11 + $0x10] sm:$0xff]  ;;  %774 = vmatpush3.bf16.msra.mxu1 %v824_v3  ;;  %s900_s5 = scalar_lea.vmem %s899_s30, 4096 }
  0x19   : > { %v216_v7 = vpack.c.bf16 %v201_v5, %v200_v4  ;;  %v203_v8 = vld [vmem:[%s1047_s11 + $0x18] sm:$0xff]  ;;  %v204_v9 = vld [vmem:[%s1047_s11 + $0x20] sm:$0xff]  ;;  %v205_v10 = vld [vmem:[%s1047_s11 + $0x28] sm:$0xff]  ;;  %767 = vmatprep.subr.bf16.mxu1 %v825_v28 }
  0x1a   : > { %v217_v11 = vpack.c.bf16 %v203_v8, %v202_v6  ;;  %v218_v12 = vpack.c.bf16 %v205_v10, %v204_v9  ;;  %v206_v13 = vld [vmem:[%s1047_s11 + $0x30] sm:$0xff]  ;;  %v207_v14 = vld [vmem:[%s1047_s11 + $0x38] sm:$0xff]  ;;  %v208_v15 = vld [vmem:[%s1047_s11 + $0x40] sm:$0xff] }
  0x1b   : > { %716 = vmatprep.mubr.msk.bf16.mxu0 %vm237_vm0, %v216_v7  ;;  %v209_v16 = vld [vmem:[%s1047_s11 + $0x48] sm:$0xff]  ;;  %v219_v17 = vpack.c.bf16 %v207_v14, %v206_v13  ;;  %v210_v19 = vld [vmem:[%s1047_s11 + $0x50] sm:$0xff]  ;;  %v211_v20 = vld [vmem:[%s1047_s11 + $0x58] sm:$0xff] }
  0x1c   : > { %717 = vmatmul.mubr.msk.bf16.vlgmr.msra.gmra.mrb[0].mxu0 %vm237_vm0, %v217_v11  ;;  %v220_v18 = vpack.c.bf16 %v209_v16, %v208_v15  ;;  %v212_v21 = vld [vmem:[%s1047_s11 + $0x60] sm:$0xff]  ;;  %v213_v22 = vld [vmem:[%s1047_s11 + $0x68] sm:$0xff]  ;;  %v221_v23 = vpack.c.bf16 %v211_v20, %v210_v19  ;;  %v214_v25 = vld [vmem:[%s1047_s11 + $0x70] sm:$0xff]  ;;  %775 = vmatpush3.bf16.msra.mxu1 %v825_v28 }
  0x1d   : > { %720 = vmatprep.mubr.msk.bf16.mxu0 %vm237_vm0, %v218_v12  ;;  %733 = vmatpush3.bf16.msra.mxu0 %v822_v1  ;;  %v222_v24 = vpack.c.bf16 %v213_v22, %v212_v21  ;;  %v215_v26 = vld [vmem:[%s1047_s11 + $0x78] sm:$0xff]  ;;  %s189_s11 = sand.u32 1, %s948_s16  }
  0x1e   : > { %734 = vmatprep.subr.bf16.mxu0 %v823_v2  ;;  %v223_v27 = vpack.c.bf16 %v215_v26, %v214_v25  ;;  %768 = vmatprep.subr.bf16.mxu1 %v826_v29  ;;  %v1097_v26 = vld [vmem:[%s1191_s3 + $0x1] ss:$0 sm:$0xff]  ;;  %s661_s12 = sshll.u32 %s189_s11, 7  ;;  %s1147_s19 = scalar_lea.sflag [#allocation3], %s189_s11 }
  0x1f   : > { %s1110_s13 = scalar_lea.vmem [#allocation2], %s661_s12 }
  0x20   : > { %776 = vmatpush3.bf16.msra.mxu1 %v826_v29  ;;  %s595_s20 = sshll.u32 %s1110_s13, 4  ;;  %s1140_s20 = int_to_ptr.vmem [resolvable:$true] %s595_s20 }
  0x21   : > { %735 = vmatpush3.bf16.msra.mxu0 %v823_v2  ;;  %769 = vmatprep.subr.bf16.mxu1 %v827_v30  ;;  %s894_s28 = scalar_lea.vmem %s1140_s20, 2048  ;;  %p901_p0 = scmp.lt.s32.totalorder %s1140_s20, %s899_s30 }
  0x22   : > { %736 = vmatprep.subr.bf16.mxu0 %v824_v3  ;;  %p895_p11 = scmp.ne.s32.totalorder %s1140_s20, %s894_s28  ;;  %p902_p1 = scmp.lt.s32.totalorder %s900_s5, %s894_s28 }
  0x24   : > { %721 = vmatmul.mubr.msk.bf16.gmra.mrb[4].mxu0 %vm237_vm0, %v219_v17  ;;  %777 = vmatpush3.bf16.msra.mxu1 %v827_v30  ;;  %p896_p12 = pnand %p895_p11, %p1024_p5  ;;  %p903_p2 = por %p902_p1, %p901_p0 }
  0x25   : > { %724 = vmatprep.mubr.msk.bf16.mxu0 %vm237_vm0, %v220_v18  ;;  %737 = vmatpush3.bf16.msra.mxu0 %v824_v3 }
  0x26   : > { %738 = vmatprep.subr.bf16.mxu0 %v825_v28  ;;  %770 = vmatprep.subr.bf16.mxu1 %v828_v31  ;;  %p897_p13 = pneg %p896_p12 }
  0x28   : > { %778 = vmatpush3.bf16.msra.mxu1 %v828_v31  ;;  %p904_p3 = pnand %p903_p2, %p897_p13 }
  0x29   : > { %739 = vmatpush3.bf16.msra.mxu0 %v825_v28  ;;  %771 = vmatprep.subr.bf16.mxu1 %v829_v32 }
  0x2a   : > { %740 = vmatprep.subr.bf16.mxu0 %v826_v29 }
  0x2c   : > { %725 = vmatmul.mubr.msk.bf16.gmra.mrb[8].mxu0 %vm237_vm0, %v221_v23  ;;  %779 = vmatpush3.bf16.msra.mxu1 %v829_v32 }
  0x2d   : > { %728 = vmatprep.mubr.msk.bf16.mxu0 %vm237_vm0, %v222_v24  ;;  %741 = vmatpush3.bf16.msra.mxu0 %v826_v29 }
  0x2e   : > { %742 = vmatprep.subr.bf16.mxu0 %v827_v30 }
  0x31   : > { %743 = vmatpush3.bf16.msra.mxu0 %v827_v30 }
  0x32   : > { %744 = vmatprep.subr.bf16.mxu0 %v828_v31 }
  0x34   : > { %729 = vmatmul.mubr.msk.bf16.gmra.mrb[12].mxu0 %vm237_vm0, %v223_v27 }
  0x35   : > { %745 = vmatpush3.bf16.msra.mxu0 %v828_v31 }
  0x36   : > { %746 = vmatprep.subr.bf16.mxu0 %v829_v32 }
  0x39   : > { %747 = vmatpush3.bf16.msra.mxu0 %v829_v32 }
  0xef   : > { %v718_v34 = vpop.f32.mrb[0].mxu0 }
  0xf0   : > { %v305_v35 = vadd.f32 %v718_v34, %v664_v33  ;;  %v296_v36 = vpop.f32.mrb[1].mxu0 }
  0xf1   : > { %v297_v37 = vadd.f32 %v664_v33, %v296_v36  ;;  %v719_v38 = vpop.f32.mrb[2].mxu0 }
  0xf2   : > { %830 = vtanh.f32 %v305_v35  ;;  %v308_v39 = vadd.f32 %v719_v38, %v664_v33  ;;  %v299_v40 = vpop.f32.mrb[3].mxu0 }
  0xf3   : > { %832 = vtanh.f32 %v297_v37  ;;  %v300_v41 = vadd.f32 %v664_v33, %v299_v40 }
  0xf4   : > { %834 = vtanh.f32 %v308_v39 }
  0xf5   : > { %836 = vtanh.f32 %v300_v41 }
  0xf7   : > { %v722_v42 = vpop.f32.mrb[4].mxu0 }
  0xf8   : > { %v321_v43 = vadd.f32 %v722_v42, %v664_v33  ;;  %v312_v44 = vpop.f32.mrb[5].mxu0 }
  0xf9   : > { %v313_v45 = vadd.f32 %v664_v33, %v312_v44  ;;  %v723_v46 = vpop.f32.mrb[6].mxu0 }
  0xfa   : > { %838 = vtanh.f32 %v321_v43  ;;  %v324_v47 = vadd.f32 %v723_v46, %v664_v33  ;;  %v315_v48 = vpop.f32.mrb[7].mxu0 }
  0xfb   : > { %840 = vtanh.f32 %v313_v45  ;;  %v316_v49 = vadd.f32 %v664_v33, %v315_v48 }
  0xfc   : > { %v831_v50 = vpop.eup %830  ;;  %842 = vtanh.f32 %v324_v47 }
  0xfd   : > { %v833_v51 = vpop.eup %832  ;;  %844 = vtanh.f32 %v316_v49 }
  0xfe   : > { %v835_v52 = vpop.eup %834 }
  0xff   : > { %v837_v53 = vpop.eup %836  ;;  %v726_v54 = vpop.f32.mrb[8].mxu0  ;;  %v376_v55 = vpack.c.bf16 %v835_v52, %v831_v50 }
 0x100   : > { %v337_v56 = vadd.f32 %v726_v54, %v664_v33  ;;  %v328_v57 = vpop.f32.mrb[9].mxu0  ;;  %v375_v58 = vpack.c.bf16 %v837_v53, %v833_v51 }
 0x101   : > { %v329_v59 = vadd.f32 %v664_v33, %v328_v57  ;;  %v727_v60 = vpop.f32.mrb[10].mxu0 }
 0x102   : > { %846 = vtanh.f32 %v337_v56  ;;  %v340_v61 = vadd.f32 %v727_v60, %v664_v33  ;;  %v331_v62 = vpop.f32.mrb[11].mxu0  ;;  %748 = vmatprep.mubr.bf16.mxu0 %v375_v58 }
 0x103   : > { %848 = vtanh.f32 %v329_v59  ;;  %v332_v63 = vadd.f32 %v664_v33, %v331_v62  ;;  %749 = vmatmul.mubr.bf16.vlgmr.msra.gmra.mrb[16].mxu0 %v376_v55 }
 0x104   : > { %v839_v0 = vpop.eup %838  ;;  %850 = vtanh.f32 %v340_v61 }
 0x105   : > { %v841_v1 = vpop.eup %840  ;;  %852 = vtanh.f32 %v332_v63 }
 0x106   : > { %v843_v2 = vpop.eup %842 }
 0x107   : > { %v845_v3 = vpop.eup %844  ;;  %v730_v4 = vpop.f32.mrb[12].mxu0  ;;  %v378_v5 = vpack.c.bf16 %v843_v2, %v839_v0 }
 0x108   : > { %v353_v6 = vadd.f32 %v730_v4, %v664_v33  ;;  %v344_v7 = vpop.f32.mrb[13].mxu0  ;;  %v377_v8 = vpack.c.bf16 %v845_v3, %v841_v1 }
 0x109   : > { %v345_v9 = vadd.f32 %v664_v33, %v344_v7  ;;  %v731_v10 = vpop.f32.mrb[14].mxu0 }
 0x10a   : > { %854 = vtanh.f32 %v353_v6  ;;  %v356_v11 = vadd.f32 %v731_v10, %v664_v33  ;;  %v347_v12 = vpop.f32.mrb[15].mxu0  ;;  %752 = vmatprep.mubr.bf16.mxu1 %v377_v8 }
 0x10b   : > { %856 = vtanh.f32 %v345_v9  ;;  %v348_v13 = vadd.f32 %v664_v33, %v347_v12  ;;  %753 = vmatmul.mubr.bf16.vlgmr.msra.gmra.mrb[0].mxu1 %v378_v5 }
 0x10c   : > { %v847_v14 = vpop.eup %846  ;;  %858 = vtanh.f32 %v356_v11 }
 0x10d   : > { %v849_v15 = vpop.eup %848  ;;  %860 = vtanh.f32 %v348_v13 }
 0x10e   : > { %v851_v16 = vpop.eup %850 }
 0x10f   : > { %v853_v17 = vpop.eup %852  ;;  %v380_v18 = vpack.c.bf16 %v851_v16, %v847_v14 }
 0x110   : > { %v379_v19 = vpack.c.bf16 %v853_v17, %v849_v15 }
 0x112   : > { %756 = vmatprep.mubr.bf16.mxu1 %v379_v19 }
 0x113   : > { %757 = vmatmul.mubr.bf16.gmra.mrb[4].mxu1 %v380_v18 }
 0x114   : > { %v855_v20 = vpop.eup %854 }
 0x115   : > { %v857_v21 = vpop.eup %856 }
 0x116   : > { %v859_v22 = vpop.eup %858 }
 0x117   : > { %v861_v23 = vpop.eup %860  ;;  %v382_v24 = vpack.c.bf16 %v859_v22, %v855_v20 }
 0x118   : > { %v381_v25 = vpack.c.bf16 %v861_v23, %v857_v21 }
 0x11a   : > { %760 = vmatprep.mubr.bf16.mxu1 %v381_v25 }
 0x11b   : > { %761 = vmatmul.mubr.bf16.gmra.mrb[8].mxu1 %v382_v24 }
 0x1d6   : > { %v750_v27 = vpop.f32.mrb[16].mxu0 }
 0x1d7   : > { %v495_v28 = vadd.f32 %v750_v27, %v1097_v26  ;;  %v486_v29 = vpop.f32.mrb[17].mxu0 }
 0x1d8   : > { %v487_v30 = vadd.f32 %v1097_v26, %v486_v29  ;;  %v751_v31 = vpop.f32.mrb[18].mxu0 }
 0x1d9   : > { %862 = vtanh.f32 %v495_v28  ;;  %v498_v32 = vadd.f32 %v751_v31, %v1097_v26  ;;  %v489_v33 = vpop.f32.mrb[19].mxu0 }
 0x1da   : > { %864 = vtanh.f32 %v487_v30  ;;  %v490_v34 = vadd.f32 %v1097_v26, %v489_v33 }
 0x1db   : > { %866 = vtanh.f32 %v498_v32 }
 0x1dc   : > { %868 = vtanh.f32 %v490_v34 }
 0x1de   : > { %v754_v35 = vpop.f32.mrb[0].mxu1 }
 0x1df   : > { %v511_v36 = vadd.f32 %v754_v35, %v1097_v26  ;;  %v502_v37 = vpop.f32.mrb[1].mxu1 }
 0x1e0   : > { %v503_v38 = vadd.f32 %v1097_v26, %v502_v37  ;;  %v755_v39 = vpop.f32.mrb[2].mxu1 }
 0x1e1   : > { %870 = vtanh.f32 %v511_v36  ;;  %v514_v40 = vadd.f32 %v755_v39, %v1097_v26  ;;  %v505_v41 = vpop.f32.mrb[3].mxu1 }
 0x1e2   : > { %872 = vtanh.f32 %v503_v38  ;;  %v506_v42 = vadd.f32 %v1097_v26, %v505_v41 }
 0x1e3   : > { %v863_v43 = vpop.eup %862  ;;  %874 = vtanh.f32 %v514_v40 }
 0x1e4   : > { %v865_v44 = vpop.eup %864  ;;  %567 = vst [vmem:[%s1110_s13 + $0x10] sm:$0xff] %v863_v43  ;;  %876 = vtanh.f32 %v506_v42 }
 0x1e5   : > { %v867_v45 = vpop.eup %866  ;;  %565 = vst [vmem:[%s1110_s13] sm:$0xff] %v865_v44 }
 0x1e6   : > { %v869_v46 = vpop.eup %868  ;;  %568 = vst [vmem:[%s1110_s13 + $0x18] sm:$0xff] %v867_v45  ;;  %v758_v47 = vpop.f32.mrb[4].mxu1 }
 0x1e7   : > { %566 = vst [vmem:[%s1110_s13 + $0x8] sm:$0xff] %v869_v46  ;;  %v527_v48 = vadd.f32 %v758_v47, %v1097_v26  ;;  %v518_v49 = vpop.f32.mrb[5].mxu1 }
 0x1e8   : > { %v519_v50 = vadd.f32 %v1097_v26, %v518_v49  ;;  %v759_v51 = vpop.f32.mrb[6].mxu1 }
 0x1e9   : > { %878 = vtanh.f32 %v527_v48  ;;  %v530_v52 = vadd.f32 %v759_v51, %v1097_v26  ;;  %v521_v53 = vpop.f32.mrb[7].mxu1 }
 0x1ea   : > { %880 = vtanh.f32 %v519_v50  ;;  %v522_v54 = vadd.f32 %v1097_v26, %v521_v53 }
 0x1eb   : > { %v871_v55 = vpop.eup %870  ;;  %882 = vtanh.f32 %v530_v52 }
 0x1ec   : > { %v873_v56 = vpop.eup %872  ;;  %571 = vst [vmem:[%s1110_s13 + $0x30] sm:$0xff] %v871_v55  ;;  %884 = vtanh.f32 %v522_v54 }
 0x1ed   : > { %v875_v57 = vpop.eup %874  ;;  %569 = vst [vmem:[%s1110_s13 + $0x20] sm:$0xff] %v873_v56 }
 0x1ee   : > { %v877_v58 = vpop.eup %876  ;;  %572 = vst [vmem:[%s1110_s13 + $0x38] sm:$0xff] %v875_v57  ;;  %v762_v59 = vpop.f32.mrb[8].mxu1 }
 0x1ef   : > { %570 = vst [vmem:[%s1110_s13 + $0x28] sm:$0xff] %v877_v58  ;;  %v543_v60 = vadd.f32 %v762_v59, %v1097_v26  ;;  %v534_v61 = vpop.f32.mrb[9].mxu1 }
 0x1f0   : > { %v535_v62 = vadd.f32 %v1097_v26, %v534_v61  ;;  %v763_v63 = vpop.f32.mrb[10].mxu1 }
 0x1f1   : > { %886 = vtanh.f32 %v543_v60  ;;  %v546_v0 = vadd.f32 %v763_v63, %v1097_v26  ;;  %v537_v1 = vpop.f32.mrb[11].mxu1 }
 0x1f2   : > { %888 = vtanh.f32 %v535_v62  ;;  %v538_v2 = vadd.f32 %v1097_v26, %v537_v1 }
 0x1f3   : > { %v879_v3 = vpop.eup %878  ;;  %890 = vtanh.f32 %v546_v0 }
 0x1f4   : > { %v881_v4 = vpop.eup %880  ;;  %575 = vst [vmem:[%s1110_s13 + $0x50] sm:$0xff] %v879_v3  ;;  %892 = vtanh.f32 %v538_v2 }
 0x1f5   : > { %v883_v5 = vpop.eup %882  ;;  %573 = vst [vmem:[%s1110_s13 + $0x40] sm:$0xff] %v881_v4 }
 0x1f6   : > { %v885_v6 = vpop.eup %884  ;;  %576 = vst [vmem:[%s1110_s13 + $0x58] sm:$0xff] %v883_v5 }
 0x1f7   : > { %574 = vst [vmem:[%s1110_s13 + $0x48] sm:$0xff] %v885_v6 }
 0x1fb   : > { %v887_v7 = vpop.eup %886 }
 0x1fc   : > { %v889_v8 = vpop.eup %888  ;;  %579 = vst [vmem:[%s1110_s13 + $0x70] sm:$0xff] %v887_v7 }
 0x1fd   : > { %v891_v9 = vpop.eup %890  ;;  %577 = vst [vmem:[%s1110_s13 + $0x60] sm:$0xff] %v889_v8 }
 0x1fe   : > { %v893_v10 = vpop.eup %892  ;;  %580 = vst [vmem:[%s1110_s13 + $0x78] sm:$0xff] %v891_v9 }
 0x1ff   : > { %578 = vst [vmem:[%s1110_s13 + $0x68] sm:$0xff] %v893_v10 }
 0x200   : > { %907 = shalt.err (!%p904_p3)
}
 0x201   : > { %s908_s6 = scalar_lea.hbm %s1138_s27, 2048  ;;  %s912_s9 = scalar_lea.hbm %s1192_s4, 4096 }
 0x202   : > { %p909_p4 = scmp.ne.s32.totalorder %s1138_s27, %s908_s6  ;;  %p913_p9 = scmp.lt.u32.totalorder %s1138_s27, %s1192_s4 }
 0x203   : > { %p914_p10 = scmp.lt.u32.totalorder %s912_s9, %s908_s6  ;;  %p916_p12 = scmp.lt.u32.totalorder %s908_s6, %s1138_s27 }
 0x204   : > { %p910_p7 = pnand %p909_p4, %p1024_p5 }
 0x205   : > { %p915_p11 = por %p914_p10, %p913_p9 }
 0x206   : > { %p911_p8 = pneg %p910_p7 }
 0x207   : > { %p917_p13 = por %p916_p12, %p915_p11 }
 0x209   : > { %p918_p0 = pnand %p917_p13, %p911_p8 }
 0x20b   : > { %921 = shalt.err (!%p918_p0)
}
 0x20c   : > { %s959_s12 = smov 128   ;;  %s960_s13 = smov 8  }
 0x20d   : > { %780 = dma.vmem_to_hbm [thread:$0]  (%p1024_p5), %s1140_s20, 2048, %s1138_s27, %s1147_s19, %s959_s12, %s959_s12, %s960_s13  }
 0x20e PF: > { %p786_p1 = scmp.ge.s32.totalorder %s956_s18, 2  ;;  %s610_s14 = sand.u32 1, %s944_s15  }
 0x20f   : > { %s611_s22 = scalar_lea.sflag [#allocation3], %s610_s14 }
 0x210   : > { %p783_p2 = pnand %p786_p1, %p1028_p6 }
 0x212   : > { %939 = dma.done.wait (!%p783_p2), %s611_s22, 2048  }
 0x213   : > { %941 = vsyncadd (!%p783_p2), %s611_s22, 4294965248  ;;  %p14_p3 = scmp.ge.s32.totalorder %s1011_s21, 4   ;;  %s1195_s15 = smov %s948_s16 }
 0x214   : > { %s1196_s16 = smov %s952_s17  ;;  %s1197_s17 = smov %s1022_s24 }
 0x215   : > { %s1198_s18 = smov %s1011_s21  ;;  %16 = sbr.rel (!%p14_p3) target bundleno = 3 (0x3), region = 71 }
 0x21c   :  { %616 = vsyncpa [#allocation3], 1 }
 0x21d   :  { %618 = vsyncpa [#allocation3 + $0x1], 1 }

</bundles_post_ra>
